<compile_context>
chip_gen: v7x
topology: tpu7x:2x2x1
jax: 0.10.0
libtpu: 0.0.40
codegen_flags: <defaults>
</compile_context>

<pallas_src>
import jax
import jax.numpy as jnp
from jax import lax
from jax.experimental import pallas as pl
from jax.experimental.pallas import tpu as pltpu


def _vit_moe_kernel(patches_ref, we_ref, bepos_ref, wg_ref, bg_ref, sel_ref,
                    lane_exp_ref, wall_ref, ball_ref, wct_ref, bc_ref, out_ref):
    # Per grid step (one batch tile of Bb elements, R = Bb * N rows):
    #   patches_ref: (R, Ppad) f32     we_ref:   (Ppad, D) f32   (zero-padded patch dim)
    #   bepos_ref:   (R, D) f32        (embed bias + position embed, tiled Bb times)
    #   wg_ref: (D, E) f32             bg_ref:   (1, E) f32
    #   sel_ref: (Bb, R) f32           (1/N on a batch element's own rows, else 0)
    #   lane_exp_ref: (1, E*D) int32   (expert id owning each fused lane: l // D)
    #   wall_ref: (D, E*D) bf16        ball_ref: (1, E*D) f32   (fused expert params)
    #   wct_ref: (E*D, Cpad) bf16      bc_ref:   (1, Cpad) f32  (classifier, tiled/padded)
    #   out_ref: (Bb, Cpad) f32

    # ---- patch embedding (+ bias + position).  Kept f32 so gating matches reference. ----
    h = jnp.dot(patches_ref[...], we_ref[...],
                preferred_element_type=jnp.float32) + bepos_ref[...]           # (R, D)

    # ---- gating: per-patch top-1 expert (first-occurrence tie-break) ----
    g = jnp.dot(h, wg_ref[...], preferred_element_type=jnp.float32) + bg_ref[...]  # (R, E)
    E = g.shape[-1]
    rmax = jnp.max(g, axis=-1, keepdims=True)                                  # (R, 1)
    iota_e = lax.broadcasted_iota(jnp.int32, g.shape, 1)
    top1 = jnp.min(jnp.where(g == rmax, iota_e, E), axis=-1, keepdims=True)    # (R, 1)
    # Lane-dense one-hot over the fused (expert, d) axis -> avoids any in-kernel reshape.
    onehot = (lane_exp_ref[...] == top1).astype(jnp.float32)                   # (R, E*D)

    # ---- fused experts: ONE lane-dense MXU matmul, bf16 inputs / f32 accumulate ----
    he = jnp.dot(h.astype(jnp.bfloat16), wall_ref[...],
                 preferred_element_type=jnp.float32) + ball_ref[...]           # (R, E*D)
    he = jnp.maximum(he, 0.0)

    # ---- per-batch pooling: Sel rows carry 1/N, so
    #        Sel @ onehot = counts_e / N      and   Sel @ he = mean_n ReLU(...)
    #      and the MoE weighting + mean-pool collapse to an elementwise product. ----
    sel = sel_ref[...]
    counts_scaled = jnp.dot(sel, onehot, preferred_element_type=jnp.float32)   # (Bb, E*D)
    pooled = jnp.dot(sel, he, preferred_element_type=jnp.float32)              # (Bb, E*D)
    weighted = counts_scaled * pooled                                          # (Bb, E*D)

    # ---- classifier against the E-times row-tiled (and lane-padded) weight ----
    logits = jnp.dot(weighted.astype(jnp.bfloat16), wct_ref[...],
                     preferred_element_type=jnp.float32) + bc_ref[...]         # (Bb, Cpad)
    out_ref[...] = logits                                                      # unmasked, lane-dense


def extract_patches(x, patch_size, num_patches):
    """Replicates torch unfold/unfold/contiguous/view exactly (incl. channel interleave)."""
    B, C, H, W = x.shape
    p = patch_size
    nh, nw = H // p, W // p
    xp = x.reshape(B, C, nh, p, nw, p).transpose(0, 1, 2, 4, 3, 5)   # (B,C,nh,nw,p,p)
    return xp.reshape(B, num_patches, C * p * p)                     # row-major flatten


def vit_moe_forward(x, params, *, patch_size, num_patches, num_classes, block_b=None):
    (We, be, pos, Wg, bg, Wexp, bexp, Wc, bc) = params
    B = x.shape[0]
    N = num_patches
    P, D = We.shape
    E = Wg.shape[1]
    C = num_classes
    ED = E * D
    CPAD = pl.cdiv(C, 128) * 128             # lane-dense padded classifier width
    PPAD = pl.cdiv(P, 128) * 128             # lane-dense padded patch dim (zero-pad, exact)

    # Batch tile.  Default: fold the whole (small) batch into a single grid step.
    # On v7x (2 TensorCores), pass block_b <= B // 2 so the parallel grid axis has
    # at least two tiles to shard across cores.
    if block_b is None:
        block_b = B if B <= 8 else 8
    assert B % block_b == 0, "batch must be divisible by block_b"
    Bb = block_b
    R = Bb * N
    num_tiles = B // Bb

    # ---- wrapper-side layout plumbing (tiny, one-time XLA ops) ----
    patches = extract_patches(x, patch_size, num_patches).astype(jnp.float32)
    patches_flat = patches.reshape(B * N, P)                          # (B*N, P)
    patches_flat = jnp.pad(patches_flat, ((0, 0), (0, PPAD - P)))     # (B*N, PPAD)
    we_pad = jnp.pad(We.astype(jnp.float32), ((0, PPAD - P), (0, 0)))  # (PPAD, D)

    bepos = jnp.tile(pos + be, (Bb, 1)).astype(jnp.float32)           # (R, D)
    sel = ((jnp.arange(Bb, dtype=jnp.int32)[:, None]
            == jnp.arange(R, dtype=jnp.int32)[None, :] // N)
           .astype(jnp.float32) / N)                                  # (Bb, R)
    lane_expert = (jnp.arange(ED, dtype=jnp.int32) // D)[None, :]     # (1, ED)

    w_all = jnp.transpose(Wexp, (1, 0, 2)).reshape(D, ED).astype(jnp.bfloat16)   # (D, E*D)
    b_all = bexp.reshape(1, ED).astype(jnp.float32)                               # (1, E*D)
    wc_tiled = jnp.pad(jnp.tile(Wc, (E, 1)),
                       ((0, 0), (0, CPAD - C))).astype(jnp.bfloat16)  # (E*D, CPAD)
    bc_pad = jnp.pad(bc, ((0, 0), (0, CPAD - C))).astype(jnp.float32)  # (1, CPAD)

    out = pl.pallas_call(
        _vit_moe_kernel,
        out_shape=jax.ShapeDtypeStruct((B, CPAD), jnp.float32),
        grid=(num_tiles,),
        in_specs=[
            pl.BlockSpec((R, PPAD), lambda t: (t, 0)),     # patches (per batch tile)
            pl.BlockSpec((PPAD, D), lambda t: (0, 0)),     # embed weight (zero-padded)
            pl.BlockSpec((R, D), lambda t: (0, 0)),        # embed bias + position embed
            pl.BlockSpec((D, E), lambda t: (0, 0)),        # gate weight
            pl.BlockSpec((1, E), lambda t: (0, 0)),        # gate bias
            pl.BlockSpec((Bb, R), lambda t: (0, 0)),       # row-pool / selection matrix
            pl.BlockSpec((1, ED), lambda t: (0, 0)),       # lane -> expert id
            pl.BlockSpec((D, ED), lambda t: (0, 0)),       # fused expert weights (bf16)
            pl.BlockSpec((1, ED), lambda t: (0, 0)),       # fused expert biases
            pl.BlockSpec((ED, CPAD), lambda t: (0, 0)),    # tiled classifier weight (bf16)
            pl.BlockSpec((1, CPAD), lambda t: (0, 0)),     # padded classifier bias
        ],
        out_specs=pl.BlockSpec((Bb, CPAD), lambda t: (t, 0)),
        compiler_params=pltpu.CompilerParams(dimension_semantics=("parallel",)),
    )(patches_flat, we_pad, bepos, Wg.astype(jnp.float32),
      bg.astype(jnp.float32), sel, lane_expert, w_all, b_all, wc_tiled, bc_pad)

    return out[:, :C]


def reference_forward(x, params, *, patch_size, num_patches):
    """Pure-JAX f32 replica of the PyTorch forward (incl. the per-patch top-1 loop).

    All matmuls use Precision.HIGHEST so the reference is true f32 (XLA's default TPU
    matmul precision is bf16, which could otherwise flip near-tied argmax decisions).
    """
    (We, be, pos, Wg, bg, Wexp, bexp, Wc, bc) = params
    hi = lax.Precision.HIGHEST
    B = x.shape[0]
    N = num_patches
    D = We.shape[1]
    patches = extract_patches(x, patch_size, num_patches)
    h = jnp.dot(patches, We, precision=hi) + be + pos          # (B,N,D)
    g = jnp.dot(h, Wg, precision=hi) + bg                      # (B,N,E)
    top1 = jax.device_get(jnp.argmax(g, axis=-1))              # (B,N)
    outs = []
    for b in range(B):
        acc = jnp.zeros((N, D), jnp.float32)
        for n in range(N):
            e = int(top1[b, n])                                # i[0].item() in torch
            acc = acc + jnp.maximum(jnp.dot(h[b], Wexp[e], precision=hi) + bexp[e], 0.0)
        outs.append(acc / N)
    out = jnp.stack(outs)                                      # (B,N,D)
    pooled = out.mean(axis=1)                                  # (B,D)
    return jnp.dot(pooled, Wc, precision=hi) + bc              # (B,num_classes)


if __name__ == "__main__":
    # Small, module-consistent shapes.
    image_size = 16
    patch_size = 4
    num_classes = 10
    d_model = 32
    num_experts = 4
    batch = 2

    num_patches = (image_size // patch_size) ** 2            # 16
    patch_dim = patch_size * patch_size * 3                  # 48

    key = jax.random.PRNGKey(0)
    keys = jax.random.split(key, 10)
    s = 0.05
    We = jax.random.normal(keys[0], (patch_dim, d_model), jnp.float32) * s
    be = jax.random.normal(keys[1], (1, d_model), jnp.float32) * s
    pos = jax.random.normal(keys[2], (num_patches, d_model), jnp.float32)   # torch.randn
    Wg = jax.random.normal(keys[3], (d_model, num_experts), jnp.float32) * s
    bg = jax.random.normal(keys[4], (1, num_experts), jnp.float32) * s
    Wexp = jax.random.normal(keys[5], (num_experts, d_model, d_model), jnp.float32) * s
    bexp = jax.random.normal(keys[6], (num_experts, 1, d_model), jnp.float32) * s
    Wc = jax.random.normal(keys[7], (d_model, num_classes), jnp.float32) * s
    bc = jax.random.normal(keys[8], (1, num_classes), jnp.float32) * s
    params = (We, be, pos, Wg, bg, Wexp, bexp, Wc, bc)

    x = jax.random.normal(keys[9], (batch, 3, image_size, image_size), jnp.float32)

    out = vit_moe_forward(
        x, params,
        patch_size=patch_size, num_patches=num_patches, num_classes=num_classes)
    out = jax.block_until_ready(out)

    ref = reference_forward(x, params, patch_size=patch_size, num_patches=num_patches)
    ref = jax.block_until_ready(ref)
    assert out.shape == (batch, num_classes)
    # Tolerance accounts for the intentional bf16 MXU inputs (f32 accumulation) on the
    # fused-expert and classifier matmuls.  Gating stays f32, so the top-1 expert
    # selection is identical to the f32 (HIGHEST-precision) reference.
    assert jnp.allclose(out, ref, rtol=5e-3, atol=5e-3), (out, ref)

    print("KERNEL_OK")
</pallas_src>

<mosaic_0001>
module attributes {stable_mosaic.version = 11 : i64} {
  func.func @_vit_moe_kernel(%arg0: i32, %arg1: memref<32x128xf32, #tpu.memory_space<vmem>>, %arg2: memref<128x32xf32, #tpu.memory_space<vmem>>, %arg3: memref<32x32xf32, #tpu.memory_space<vmem>>, %arg4: memref<32x4xf32, #tpu.memory_space<vmem>>, %arg5: memref<1x4xf32, #tpu.memory_space<vmem>>, %arg6: memref<2x32xf32, #tpu.memory_space<vmem>>, %arg7: memref<1x128xi32, #tpu.memory_space<vmem>>, %arg8: memref<32x128xbf16, #tpu.memory_space<vmem>>, %arg9: memref<1x128xf32, #tpu.memory_space<vmem>>, %arg10: memref<128x128xbf16, #tpu.memory_space<vmem>>, %arg11: memref<1x128xf32, #tpu.memory_space<vmem>>, %arg12: memref<2x128xf32, #tpu.memory_space<vmem>>) attributes {dimension_semantics = [#tpu.dimension_semantics<parallel>], iteration_bounds = array<i64: 1>, scalar_prefetch = 0 : i64, scratch_operands = 0 : i64, tpu.core_type = #tpu.core_type<tc>, window_params = [{transform_indices = @transform_0, window_bounds = array<i64: 32, 128>}, {pipeline_mode = #tpu.pipeline_mode<synchronous>, transform_indices = @transform_1, window_bounds = array<i64: 128, 32>}, {pipeline_mode = #tpu.pipeline_mode<synchronous>, transform_indices = @transform_2, window_bounds = array<i64: 32, 32>}, {pipeline_mode = #tpu.pipeline_mode<synchronous>, transform_indices = @transform_3, window_bounds = array<i64: 32, 4>}, {pipeline_mode = #tpu.pipeline_mode<synchronous>, transform_indices = @transform_4, window_bounds = array<i64: 1, 4>}, {pipeline_mode = #tpu.pipeline_mode<synchronous>, transform_indices = @transform_5, window_bounds = array<i64: 2, 32>}, {pipeline_mode = #tpu.pipeline_mode<synchronous>, transform_indices = @transform_6, window_bounds = array<i64: 1, 128>}, {pipeline_mode = #tpu.pipeline_mode<synchronous>, transform_indices = @transform_7, window_bounds = array<i64: 32, 128>}, {pipeline_mode = #tpu.pipeline_mode<synchronous>, transform_indices = @transform_8, window_bounds = array<i64: 1, 128>}, {pipeline_mode = #tpu.pipeline_mode<synchronous>, transform_indices = @transform_9, window_bounds = array<i64: 128, 128>}, {pipeline_mode = #tpu.pipeline_mode<synchronous>, transform_indices = @transform_10, window_bounds = array<i64: 1, 128>}, {transform_indices = @transform_11, window_bounds = array<i64: 2, 128>}]} {
    %c0 = arith.constant 0 : index
    %c0_0 = arith.constant 0 : index
    %0 = vector.load %arg1[%c0, %c0_0] : memref<32x128xf32, #tpu.memory_space<vmem>>, vector<32x128xf32>
    %c0_1 = arith.constant 0 : index
    %c0_2 = arith.constant 0 : index
    %1 = vector.load %arg2[%c0_1, %c0_2] : memref<128x32xf32, #tpu.memory_space<vmem>>, vector<128x32xf32>
    %cst = arith.constant dense<0.000000e+00> : vector<32x32xf32>
    %2 = tpu.matmul %0, %1, %cst {dimension_numbers = #tpu.dot_dimension_numbers<[1], [0], [0], [1], [0, 0, 1, 1], [], []>} : vector<32x128xf32>, vector<128x32xf32>, vector<32x32xf32> -> vector<32x32xf32>
    %c0_3 = arith.constant 0 : index
    %c0_4 = arith.constant 0 : index
    %3 = vector.load %arg3[%c0_3, %c0_4] : memref<32x32xf32, #tpu.memory_space<vmem>>, vector<32x32xf32>
    %4 = arith.addf %2, %3 : vector<32x32xf32>
    %c0_5 = arith.constant 0 : index
    %c0_6 = arith.constant 0 : index
    %5 = vector.load %arg4[%c0_5, %c0_6] : memref<32x4xf32, #tpu.memory_space<vmem>>, vector<32x4xf32>
    %cst_7 = arith.constant dense<0.000000e+00> : vector<32x4xf32>
    %6 = tpu.matmul %4, %5, %cst_7 {dimension_numbers = #tpu.dot_dimension_numbers<[1], [0], [0], [1], [0, 0, 1, 1], [], []>} : vector<32x32xf32>, vector<32x4xf32>, vector<32x4xf32> -> vector<32x4xf32>
    %c0_8 = arith.constant 0 : index
    %c0_9 = arith.constant 0 : index
    %7 = vector.load %arg5[%c0_8, %c0_9] : memref<1x4xf32, #tpu.memory_space<vmem>>, vector<1x4xf32>
    %8 = vector.broadcast %7 : vector<1x4xf32> to vector<32x4xf32>
    %9 = arith.addf %6, %8 : vector<32x4xf32>
    %cst_10 = arith.constant dense<0xFF800000> : vector<32xf32>
    %10 = vector.multi_reduction <maximumf>, %9, %cst_10 [1] : vector<32x4xf32> to vector<32xf32>
    %11 = vector.shape_cast %10 : vector<32xf32> to vector<32x1xf32>
    %12 = tpu.iota {dimensions = array<i32: 1>} : vector<32x4xi32>
    %13 = vector.broadcast %11 : vector<32x1xf32> to vector<32x4xf32>
    %14 = arith.cmpf oeq, %9, %13 : vector<32x4xf32>
    %c4_i32 = arith.constant 4 : i32
    %15 = vector.broadcast %c4_i32 : i32 to vector<32x4xi32>
    %16 = arith.select %14, %12, %15 : vector<32x4xi1>, vector<32x4xi32>
    %cst_11 = arith.constant dense<2147483647> : vector<32xi32>
    %17 = vector.multi_reduction <minsi>, %16, %cst_11 [1] : vector<32x4xi32> to vector<32xi32>
    %18 = vector.shape_cast %17 : vector<32xi32> to vector<32x1xi32>
    %c0_12 = arith.constant 0 : index
    %c0_13 = arith.constant 0 : index
    %19 = vector.load %arg7[%c0_12, %c0_13] : memref<1x128xi32, #tpu.memory_space<vmem>>, vector<1x128xi32>
    %20 = vector.broadcast %19 : vector<1x128xi32> to vector<32x128xi32>
    %21 = vector.broadcast %18 : vector<32x1xi32> to vector<32x128xi32>
    %22 = arith.cmpi eq, %20, %21 : vector<32x128xi32>
    %23 = arith.extui %22 : vector<32x128xi1> to vector<32x128xi32>
    %24 = arith.sitofp %23 : vector<32x128xi32> to vector<32x128xf32>
    %25 = arith.truncf %4 : vector<32x32xf32> to vector<32x32xbf16>
    %c0_14 = arith.constant 0 : index
    %c0_15 = arith.constant 0 : index
    %26 = vector.load %arg8[%c0_14, %c0_15] : memref<32x128xbf16, #tpu.memory_space<vmem>>, vector<32x128xbf16>
    %cst_16 = arith.constant dense<0.000000e+00> : vector<32x128xf32>
    %27 = tpu.matmul %25, %26, %cst_16 {dimension_numbers = #tpu.dot_dimension_numbers<[1], [0], [0], [1], [0, 0, 1, 1], [], []>} : vector<32x32xbf16>, vector<32x128xbf16>, vector<32x128xf32> -> vector<32x128xf32>
    %c0_17 = arith.constant 0 : index
    %c0_18 = arith.constant 0 : index
    %28 = vector.load %arg9[%c0_17, %c0_18] : memref<1x128xf32, #tpu.memory_space<vmem>>, vector<1x128xf32>
    %29 = vector.broadcast %28 : vector<1x128xf32> to vector<32x128xf32>
    %30 = arith.addf %27, %29 : vector<32x128xf32>
    %cst_19 = arith.constant 0.000000e+00 : f32
    %31 = vector.broadcast %cst_19 : f32 to vector<32x128xf32>
    %32 = arith.maximumf %30, %31 : vector<32x128xf32>
    %c0_20 = arith.constant 0 : index
    %c0_21 = arith.constant 0 : index
    %33 = vector.load %arg6[%c0_20, %c0_21] : memref<2x32xf32, #tpu.memory_space<vmem>>, vector<2x32xf32>
    %cst_22 = arith.constant dense<0.000000e+00> : vector<2x128xf32>
    %34 = tpu.matmul %33, %24, %cst_22 {dimension_numbers = #tpu.dot_dimension_numbers<[1], [0], [0], [1], [0, 0, 1, 1], [], []>} : vector<2x32xf32>, vector<32x128xf32>, vector<2x128xf32> -> vector<2x128xf32>
    %cst_23 = arith.constant dense<0.000000e+00> : vector<2x128xf32>
    %35 = tpu.matmul %33, %32, %cst_23 {dimension_numbers = #tpu.dot_dimension_numbers<[1], [0], [0], [1], [0, 0, 1, 1], [], []>} : vector<2x32xf32>, vector<32x128xf32>, vector<2x128xf32> -> vector<2x128xf32>
    %36 = arith.mulf %34, %35 : vector<2x128xf32>
    %37 = arith.truncf %36 : vector<2x128xf32> to vector<2x128xbf16>
    %c0_24 = arith.constant 0 : index
    %c0_25 = arith.constant 0 : index
    %38 = vector.load %arg10[%c0_24, %c0_25] : memref<128x128xbf16, #tpu.memory_space<vmem>>, vector<128x128xbf16>
    %cst_26 = arith.constant dense<0.000000e+00> : vector<2x128xf32>
    %39 = tpu.matmul %37, %38, %cst_26 {dimension_numbers = #tpu.dot_dimension_numbers<[1], [0], [0], [1], [0, 0, 1, 1], [], []>} : vector<2x128xbf16>, vector<128x128xbf16>, vector<2x128xf32> -> vector<2x128xf32>
    %c0_27 = arith.constant 0 : index
    %c0_28 = arith.constant 0 : index
    %40 = vector.load %arg11[%c0_27, %c0_28] : memref<1x128xf32, #tpu.memory_space<vmem>>, vector<1x128xf32>
    %41 = vector.broadcast %40 : vector<1x128xf32> to vector<2x128xf32>
    %42 = arith.addf %39, %41 : vector<2x128xf32>
    %c0_29 = arith.constant 0 : index
    %c0_30 = arith.constant 0 : index
    %43 = vector.load %arg12[%c0_29, %c0_30] : memref<2x128xf32, #tpu.memory_space<vmem>>, vector<2x128xf32>
    tpu.vector_store %arg12[%c0_29, %c0_30], %42 {strides = array<i32>} : memref<2x128xf32, #tpu.memory_space<vmem>>, vector<2x128xf32>,
    return
  }
  func.func @transform_0(%arg0: i32) -> (i32, i32) {
    %c0_i32 = arith.constant 0 : i32
    %c0_i32_0 = arith.constant 0 : i32
    return %arg0, %c0_i32 : i32, i32
  }
  func.func @transform_1(%arg0: i32) -> (i32, i32) {
    %c0_i32 = arith.constant 0 : i32
    %c0_i32_0 = arith.constant 0 : i32
    %c0_i32_1 = arith.constant 0 : i32
    return %c0_i32, %c0_i32_0 : i32, i32
  }
  func.func @transform_2(%arg0: i32) -> (i32, i32) {
    %c0_i32 = arith.constant 0 : i32
    %c0_i32_0 = arith.constant 0 : i32
    %c0_i32_1 = arith.constant 0 : i32
    return %c0_i32, %c0_i32_0 : i32, i32
  }
  func.func @transform_3(%arg0: i32) -> (i32, i32) {
    %c0_i32 = arith.constant 0 : i32
    %c0_i32_0 = arith.constant 0 : i32
    %c0_i32_1 = arith.constant 0 : i32
    return %c0_i32, %c0_i32_0 : i32, i32
  }
  func.func @transform_4(%arg0: i32) -> (i32, i32) {
    %c0_i32 = arith.constant 0 : i32
    %c0_i32_0 = arith.constant 0 : i32
    %c0_i32_1 = arith.constant 0 : i32
    return %c0_i32, %c0_i32_0 : i32, i32
  }
  func.func @transform_5(%arg0: i32) -> (i32, i32) {
    %c0_i32 = arith.constant 0 : i32
    %c0_i32_0 = arith.constant 0 : i32
    %c0_i32_1 = arith.constant 0 : i32
    return %c0_i32, %c0_i32_0 : i32, i32
  }
  func.func @transform_6(%arg0: i32) -> (i32, i32) {
    %c0_i32 = arith.constant 0 : i32
    %c0_i32_0 = arith.constant 0 : i32
    %c0_i32_1 = arith.constant 0 : i32
    return %c0_i32, %c0_i32_0 : i32, i32
  }
  func.func @transform_7(%arg0: i32) -> (i32, i32) {
    %c0_i32 = arith.constant 0 : i32
    %c0_i32_0 = arith.constant 0 : i32
    %c0_i32_1 = arith.constant 0 : i32
    return %c0_i32, %c0_i32_0 : i32, i32
  }
  func.func @transform_8(%arg0: i32) -> (i32, i32) {
    %c0_i32 = arith.constant 0 : i32
    %c0_i32_0 = arith.constant 0 : i32
    %c0_i32_1 = arith.constant 0 : i32
    return %c0_i32, %c0_i32_0 : i32, i32
  }
  func.func @transform_9(%arg0: i32) -> (i32, i32) {
    %c0_i32 = arith.constant 0 : i32
    %c0_i32_0 = arith.constant 0 : i32
    %c0_i32_1 = arith.constant 0 : i32
    return %c0_i32, %c0_i32_0 : i32, i32
  }
  func.func @transform_10(%arg0: i32) -> (i32, i32) {
    %c0_i32 = arith.constant 0 : i32
    %c0_i32_0 = arith.constant 0 : i32
    %c0_i32_1 = arith.constant 0 : i32
    return %c0_i32, %c0_i32_0 : i32, i32
  }
  func.func @transform_11(%arg0: i32) -> (i32, i32) {
    %c0_i32 = arith.constant 0 : i32
    %c0_i32_0 = arith.constant 0 : i32
    return %arg0, %c0_i32 : i32, i32
  }
}

</mosaic_0001>

<bundles_post_ra>
// kernel: tpu_custom_call.1
= control target key start
LH: loop header
LB: loop body
LE: loop exit
PB: predicated region body
PF: predicated region fallthrough
CT: control target
= control target key end

     0   :  { %s1219_s0 = inlined_call_operand.vmem [shape: f32[32,128], index: 0, kind: input, shape index: {}]   ;;  %s1220_s1 = inlined_call_operand.vmem [shape: f32[128,32], index: 1, kind: input, shape index: {}]   ;;  %s1221_s2 = inlined_call_operand.vmem [shape: f32[32,32], index: 2, kind: input, shape index: {}]   ;;  %s1222_s3 = inlined_call_operand.vmem [shape: f32[32,4], index: 3, kind: input, shape index: {}]   ;;  %s1223_s4 = inlined_call_operand.vmem [shape: f32[1,4], index: 4, kind: input, shape index: {}]   ;;  %s1224_s5 = inlined_call_operand.vmem [shape: f32[2,32], index: 5, kind: input, shape index: {}]   ;;  %s1225_s6 = inlined_call_operand.vmem [shape: s32[1,128], index: 6, kind: input, shape index: {}]   ;;  %s1226_s7 = inlined_call_operand.vmem [shape: bf16[32,128], index: 7, kind: input, shape index: {}]   ;;  %s1227_s8 = inlined_call_operand.vmem [shape: f32[1,128], index: 8, kind: input, shape index: {}]   ;;  %s1228_s9 = inlined_call_operand.vmem [shape: bf16[128,128], index: 9, kind: input, shape index: {}]   ;;  %s1229_s10 = inlined_call_operand.vmem [shape: f32[1,128], index: 10, kind: input, shape index: {}]   ;;  %s1230_s11 = inlined_call_operand.hbm [shape: f32[2,128], index: 11, kind: output, shape index: {}]  }
   0x1   :  { %v44_v0 = vld [vmem:[%s1220_s1] sm:$0xff]  ;;  %v45_v1 = vld [vmem:[%s1220_s1 + $0x8] sm:$0xff]  ;;  %v46_v2 = vld [vmem:[%s1220_s1 + $0x10] sm:$0xff] }
   0x2   :  { %v897_v3 = vpack.c.bf16 %v45_v1, %v44_v0  ;;  %v47_v4 = vld [vmem:[%s1220_s1 + $0x18] sm:$0xff]  ;;  %v48_v6 = vld [vmem:[%s1220_s1 + $0x20] sm:$0xff]  ;;  %v49_v7 = vld [vmem:[%s1220_s1 + $0x28] sm:$0xff] }
   0x3   :  { %v901_v5 = vpack.c.bf16 %v47_v4, %v46_v2  ;;  %v905_v8 = vpack.c.bf16 %v49_v7, %v48_v6  ;;  %v40_v9 = vld [vmem:[%s1219_s0] sm:$0xff]  ;;  %v50_v10 = vld [vmem:[%s1220_s1 + $0x30] sm:$0xff]  ;;  %v51_v11 = vld [vmem:[%s1220_s1 + $0x38] sm:$0xff] }
   0x4   :  { %898 = vmatprep.subr.bf16.mxu1 %v897_v3  ;;  %827 = vmatprep.mubr.f32.mxu1 %v40_v9  ;;  %v149_v12 = vld [vmem:[%s1222_s3] sm:$0xff]  ;;  %v150_v13 = vld [vmem:[%s1222_s3 + $0x8] sm:$0xff]  ;;  %v909_v17 = vpack.c.bf16 %v51_v11, %v50_v10  ;;  %v54_v18 = vld [vmem:[%s1220_s1 + $0x50] sm:$0xff] }
   0x5   :  { %900 = vmatpush3.bf16.msra.mxu1 %v897_v3  ;;  %v52_v14 = vld [vmem:[%s1220_s1 + $0x40] sm:$0xff]  ;;  %v53_v15 = vld [vmem:[%s1220_s1 + $0x48] sm:$0xff]  ;;  %v929_v16 = vpack.c.bf16 %v150_v13, %v149_v12  ;;  %v55_v20 = vld [vmem:[%s1220_s1 + $0x58] sm:$0xff] }
   0x6   :  { %902 = vmatprep.subr.bf16.mxu1 %v901_v5  ;;  %v913_v19 = vpack.c.bf16 %v53_v15, %v52_v14 }
   0x7   :  { %930 = vmatprep.subr.bf16.mxu0 %v929_v16 }
   0x8   :  { %932 = vmatpush3.bf16.msra.mxu0 %v929_v16 }
   0x9   :  { %904 = vmatpush3.bf16.msra.mxu1 %v901_v5 }
   0xa   :  { %906 = vmatprep.subr.bf16.mxu1 %v905_v8 }
   0xd   :  { %908 = vmatpush3.bf16.msra.mxu1 %v905_v8 }
   0xe   :  { %910 = vmatprep.subr.bf16.mxu1 %v909_v17 }
   0xf   :  { %16 = vsyncpa [#allocation3], 0  ;;  %v917_v21 = vpack.c.bf16 %v55_v20, %v54_v18  ;;  %v56_v22 = vld [vmem:[%s1220_s1 + $0x60] sm:$0xff]  ;;  %v57_v23 = vld [vmem:[%s1220_s1 + $0x68] sm:$0xff]  ;;  %vm160_vm0 = vcmask 261120   ;;  %vm258_vm1 = vcmask 31744   ;;  %v271_v14 = vlaneseq }
  0x10   :  { %v921_v24 = vpack.c.bf16 %v57_v23, %v56_v22  ;;  %v58_v25 = vld [vmem:[%s1220_s1 + $0x70] sm:$0xff]  ;;  %v59_v26 = vld [vmem:[%s1220_s1 + $0x78] sm:$0xff]  ;;  %v41_v28 = vld [vmem:[%s1219_s0 + $0x8] sm:$0xff]  ;;  %vm989_vm10 = vmmov 0   ;;  %s992_s15 = smov [#allocation2]  }
  0x11   :  { %912 = vmatpush3.bf16.msra.mxu1 %v909_v17  ;;  %v925_v27 = vpack.c.bf16 %v59_v26, %v58_v25  ;;  %v42_v29 = vld [vmem:[%s1219_s0 + $0x10] sm:$0xff]  ;;  %v43_v30 = vld [vmem:[%s1219_s0 + $0x18] sm:$0xff]  ;;  %v954_v34 = vld [vmem:[%s1226_s7] sm:$0xff]   ;;  %v272_v15 = vand.u32 127, %v271_v14  ;;  %s706_s16 = sshll.u32 %s992_s15, 4  ;;  %s707_s16 = int_to_ptr.vmem [resolvable:$true] %s706_s16 }
  0x12   :  { %914 = vmatprep.subr.bf16.mxu1 %v913_v19  ;;  %v151_v31 = vld [vmem:[%s1222_s3 + $0x10] sm:$0xff]  ;;  %v152_v32 = vld [vmem:[%s1222_s3 + $0x18] sm:$0xff]  ;;  %v61_v35 = vld [vmem:[%s1221_s2 + $0x8] sm:$0xff]  ;;  %p969_p1 = scmp.lt.s32.totalorder %s707_s16, %s707_s16 }
  0x13   :  { %v933_v33 = vpack.c.bf16 %v152_v32, %v151_v31  ;;  %v60_v36 = vld [vmem:[%s1221_s2] sm:$0xff]  ;;  %v63_v41 = vld [vmem:[%s1221_s2 + $0x18] sm:$0xff]  ;;  %v62_v42 = vld [vmem:[%s1221_s2 + $0x10] sm:$0xff] }
  0x14   :  { %v955_v43 = vld [vmem:[%s1226_s7 + $0x8] sm:$0xff]   ;;  %v714_v50 = vld [vmem:[%s1223_s4] ss:$0 sm:$0xff] }
  0x15   :  { %916 = vmatpush3.bf16.msra.mxu1 %v913_v19  ;;  %934 = vmatprep.subr.bf16.mxu0 %v933_v33  ;;  %v724_v59 = vld [vmem:[%s1227_s8] ss:$0 sm:$0xff] }
  0x16   :  { %918 = vmatprep.subr.bf16.mxu1 %v917_v21  ;;  %936 = vmatpush3.bf16.msra.mxu0 %v933_v33 }
  0x17   :  { %847 = vmatprep.subr.bf16.mxu0 %v954_v34 }
  0x19   :  { %920 = vmatpush3.bf16.msra.mxu1 %v917_v21 }
  0x1a   :  { %922 = vmatprep.subr.bf16.mxu1 %v921_v24 }
  0x1d   :  { %924 = vmatpush3.bf16.msra.mxu1 %v921_v24 }
  0x1e   :  { %926 = vmatprep.subr.bf16.mxu1 %v925_v27 }
  0x21   :  { %928 = vmatpush3.bf16.msra.mxu1 %v925_v27 }
  0x24   :  { %828 = vmatmul.mubr.f32.vlgmr.msra.gmra.mrb[0].mxu1 %v41_v28 }
  0x25   :  { %830 = vmatprep.mubr.f32.mxu1 %v42_v29 }
  0x28   :  { %831 = vmatmul.mubr.f32.gmra.mrb[2].mxu1 %v43_v30 }
  0xf7   :  { %v829_v37 = vpop.f32.mrb[0].mxu1 }
  0xf8   :  { %v136_v38 = vadd.f32 %v829_v37, %v61_v35  ;;  %v130_v39 = vpop.f32.mrb[1].mxu1 }
  0xf9   :  { %v131_v40 = vadd.f32 %v130_v39, %v60_v36 }
  0xfb   :  { %v358_v44 = vpack.c.bf16 %v136_v38, %v131_v40  ;;  %v832_v45 = vpop.f32.mrb[2].mxu1  ;;  %841 = vmatprep.mubr.msk.f32.mxu0 %vm160_vm0, %v131_v40 }
  0xfc   :  { %v146_v46 = vadd.f32 %v832_v45, %v63_v41  ;;  %v140_v47 = vpop.f32.mrb[3].mxu1  ;;  %842 = vmatmul.mubr.msk.f32.vlgmr.msra.gmra.mrb[0].mxu0 %vm160_vm0, %v136_v38 }
  0xfd   :  { %v141_v48 = vadd.f32 %v140_v47, %v62_v42  ;;  %848 = vmatpush3.bf16.msra.mxu0 %v954_v34 }
  0xfe   :  { %849 = vmatprep.subr.bf16.mxu0 %v955_v43 }
  0xff   :  { %v359_v49 = vpack.c.bf16 %v146_v46, %v141_v48  ;;  %844 = vmatprep.mubr.msk.f32.mxu0 %vm160_vm0, %v141_v48 }
 0x100   :  { %845 = vmatmul.mubr.msk.f32.gmra.mrb[2].mxu0 %vm160_vm0, %v146_v46 }
 0x101   :  { %850 = vmatpush3.bf16.msra.mxu0 %v955_v43  ;;  %851 = vmatprep.mubr.msk.bf16.mxu0 %vm160_vm0, %v358_v44 }
 0x104   :  { %852 = vmatmul.mubr.msk.bf16.vlgmr.msra.gmra.mrb[4].mxu0 %vm160_vm0, %v359_v49 }
 0x1cf   :  { %v843_v51 = vpop.f32.mrb[0].mxu0 }
 0x1d0   :  { %v239_v52 = vpop.f32.mrb[1].mxu0  ;;  %v245_v54 = vadd.f32 %v843_v51, %v714_v50 }
 0x1d1   :  { %v240_v53 = vadd.f32 %v714_v50, %v239_v52  ;;  %v988_v52 = vmov 0.0|0.0  }
 0x1d2   :  { %v262_v63 = vsel %vm258_vm1, %v245_v54, -inf  ;;  %937 = vmatprep.subr.bf16.mxu1 %v988_v52 }
 0x1d3   :  { %v846_v55 = vpop.f32.mrb[2].mxu0  ;;  %v259_v56 = vsel %vm258_vm1, %v240_v53, -inf }
 0x1d4   :  { %v249_v57 = vpop.f32.mrb[3].mxu0  ;;  %260 = vmax.xlane.f32.xlu0 %v259_v56  ;;  %v255_v60 = vadd.f32 %v846_v55, %v714_v50  ;;  %v957_v55 = vld [vmem:[%s1228_s9 + $0x8] sm:$0xff]   ;;  %v958_v56 = vld [vmem:[%s1228_s9 + $0x10] sm:$0xff]  }
 0x1d5   :  { %v250_v58 = vadd.f32 %v714_v50, %v249_v57  ;;  %v959_v57 = vld [vmem:[%s1228_s9 + $0x18] sm:$0xff]  }
 0x1d6   :  { %v268_v7 = vsel %vm258_vm1, %v255_v60, -inf }
 0x1d7   :  { %v853_v61 = vpop.f32.mrb[4].mxu0  ;;  %v265_v62 = vsel %vm258_vm1, %v250_v58, -inf }
 0x1d8   :  { %v432_v0 = vadd.f32 %v853_v61, %v724_v59  ;;  %v423_v1 = vpop.f32.mrb[5].mxu0  ;;  %266 = vmax.xlane.f32.xlu1 %v265_v62  ;;  %263 = vmax.xlane.f32.xlu0 %v262_v63 }
 0x1d9   :  { %v424_v2 = vadd.f32 %v724_v59, %v423_v1  ;;  %v854_v3 = vpop.f32.mrb[6].mxu0 }
 0x1da   :  { %v435_v4 = vadd.f32 %v854_v3, %v724_v59  ;;  %v426_v5 = vpop.f32.mrb[7].mxu0  ;;  %v440_v8 = vmax.f32 %v432_v0, 0.0 }
 0x1db   :  { %v427_v6 = vadd.f32 %v724_v59, %v426_v5  ;;  %v438_v10 = vmax.f32 %v424_v2, 0.0 }
 0x1dc   :  { %v441_v9 = vmax.f32 %v435_v4, 0.0  ;;  %269 = vmax.xlane.f32.xlu1 %v268_v7 }
 0x1dd   :  { %v439_v11 = vmax.f32 %v427_v6, 0.0 }
 0x1de   :  { %v1159_v12 = vpack.c.bf16 %v441_v9, %v440_v8  ;;  %v719_v8 = vld [vmem:[%s1225_s6] ss:$0 sm:$0xff] }
 0x1df   :  { %v1161_v13 = vpack.c.bf16 %v439_v11, %v438_v10 }
 0x261   :  { %v261_v16 = vpop.xlane.xlu0 %260 }
 0x262   :  { %vm273_vm2 = vcmp.eq.f32.partialorder %v240_v53, %v261_v16  ;;  %v990_v53 = vmov 0.0  }
 0x263   :  { %v277_v17 = vsel %vm273_vm2, %v272_v15, 4  ;;  %863 = vmatprep.mubr.msk.f32.mxu1 %vm989_vm10, %v990_v53  ;;  %877 = vmatprep.subr.bf16.mxu0 %v990_v53 }
 0x264   :  { %v281_v18 = vsel %vm258_vm1, %v277_v17, 2147483647  ;;  %893 = vmatprep.mubr.msk.bf16.mxu0 %vm989_vm10, %v990_v53 }
 0x265   :  { %v267_v19 = vpop.xlane.xlu1 %266  ;;  %v264_v20 = vpop.xlane.xlu0 %263  ;;  %v283_v21 = vshra.s32 %v281_v18, 16  ;;  %v282_v36 = vand.u32 65535, %v281_v18  ;;  %v991_v18 = vmov 1.0|1.0  }
 0x266   :  { %vm275_vm3 = vcmp.eq.f32.partialorder %v250_v58, %v267_v19  ;;  %vm274_vm4 = vcmp.eq.f32.partialorder %v245_v54, %v264_v20  ;;  %v956_v54 = vld [vmem:[%s1228_s9] sm:$0xff]   ;;  %v961_v20 = vld [vmem:[%s1228_s9 + $0x28] sm:$0xff]  }
 0x267   :  { %v279_v22 = vsel %vm275_vm3, %v272_v15, 4  ;;  %v278_v23 = vsel %vm274_vm4, %v272_v15, 4  ;;  %v285_v24 = vcvt.s32.f32 %v283_v21  ;;  %v284_v38 = vcvt.s32.f32 %v282_v36  ;;  %878 = vmatpush3.bf16.msra.mxu0 %v956_v54  ;;  %v960_v58 = vld [vmem:[%s1228_s9 + $0x20] sm:$0xff]   ;;  %v962_v21 = vld [vmem:[%s1228_s9 + $0x30] sm:$0xff]  }
 0x268   :  { %v311_v25 = vsel %vm258_vm1, %v279_v22, 2147483647  ;;  %v296_v26 = vsel %vm258_vm1, %v278_v23, 2147483647  ;;  %879 = vmatprep.subr.bf16.mxu0 %v990_v53  ;;  %v442_v19 = vld [vmem:[%s1224_s5] sm:$0x3] }
 0x269   :  { %v270_v27 = vpop.xlane.xlu1 %269  ;;  %286 = vmin.xlane.f32.xlu0 %v285_v24  ;;  %v313_v28 = vshra.s32 %v311_v25, 16  ;;  %v298_v29 = vshra.s32 %v296_v26, 16  ;;  %v297_v39 = vand.u32 65535, %v296_v26  ;;  %v312_v40 = vand.u32 65535, %v311_v25 }
 0x26a   :  { %vm276_vm5 = vcmp.eq.f32.partialorder %v255_v60, %v270_v27  ;;  %v735_v27 = vld [vmem:[%s1229_s10] ss:$0 sm:$0xff] }
 0x26b   :  { %v280_v30 = vsel %vm276_vm5, %v272_v15, 4  ;;  %v315_v31 = vcvt.s32.f32 %v313_v28  ;;  %v300_v32 = vcvt.s32.f32 %v298_v29  ;;  %v299_v44 = vcvt.s32.f32 %v297_v39  ;;  %880 = vmatpush3.bf16.msra.mxu0 %v957_v55 }
 0x26c   :  { %v326_v33 = vsel %vm258_vm1, %v280_v30, 2147483647  ;;  %v314_v45 = vcvt.s32.f32 %v312_v40  ;;  %881 = vmatprep.subr.bf16.mxu0 %v990_v53 }
 0x26d   :  { %316 = vmin.xlane.f32.xlu0 %v315_v31  ;;  %301 = vmin.xlane.f32.xlu1 %v300_v32  ;;  %v328_v34 = vshra.s32 %v326_v33, 16  ;;  %v327_v46 = vand.u32 65535, %v326_v33 }
 0x26f   :  { %v330_v35 = vcvt.s32.f32 %v328_v34  ;;  %v329_v50 = vcvt.s32.f32 %v327_v46  ;;  %882 = vmatpush3.bf16.msra.mxu0 %v958_v56 }
 0x270   :  { %883 = vmatprep.subr.bf16.mxu0 %v990_v53 }
 0x271   :  { %331 = vmin.xlane.f32.xlu1 %v330_v35 }
 0x273   :  { %884 = vmatpush3.bf16.msra.mxu0 %v959_v57 }
 0x274   :  { %885 = vmatprep.subr.bf16.mxu0 %v990_v53 }
 0x277   :  { %886 = vmatpush3.bf16.msra.mxu0 %v960_v58 }
 0x278   :  { %887 = vmatprep.subr.bf16.mxu0 %v990_v53 }
 0x27b   :  { %888 = vmatpush3.bf16.msra.mxu0 %v961_v20 }
 0x27c   :  { %889 = vmatprep.subr.bf16.mxu0 %v990_v53 }
 0x27f   :  { %890 = vmatpush3.bf16.msra.mxu0 %v962_v21 }
 0x280   :  { %891 = vmatprep.subr.bf16.mxu0 %v990_v53 }
 0x2f6   :  { %v287_v37 = vpop.xlane.xlu0 %286 }
 0x2f7   :  { %vm288_vm6 = vcmp.eq.f32.partialorder %v285_v24, %v287_v37  ;;  %v293_v59 = vcvt.f32.s32 %v287_v37 }
 0x2f8   :  { %v289_v41 = vsel %vm288_vm6, %v284_v38, inf }
 0x2f9   :  { %290 = vmin.xlane.f32.xlu0 %v289_v41  ;;  %v294_v63 = vshll.u32 %v293_v59, 16 }
 0x2fa   :  { %v302_v42 = vpop.xlane.xlu1 %301  ;;  %v317_v43 = vpop.xlane.xlu0 %316 }
 0x2fb   :  { %vm303_vm7 = vcmp.eq.f32.partialorder %v300_v32, %v302_v42  ;;  %vm318_vm8 = vcmp.eq.f32.partialorder %v315_v31, %v317_v43  ;;  %v308_v61 = vcvt.f32.s32 %v302_v42  ;;  %v323_v0 = vcvt.f32.s32 %v317_v43 }
 0x2fc   :  { %v304_v47 = vsel %vm303_vm7, %v299_v44, inf  ;;  %v319_v48 = vsel %vm318_vm8, %v314_v45, inf }
 0x2fd   :  { %305 = vmin.xlane.f32.xlu1 %v304_v47  ;;  %320 = vmin.xlane.f32.xlu0 %v319_v48  ;;  %v309_v4 = vshll.u32 %v308_v61, 16  ;;  %v324_v9 = vshll.u32 %v323_v0, 16 }
 0x2fe   :  { %v332_v49 = vpop.xlane.xlu1 %331 }
 0x2ff   :  { %vm333_vm9 = vcmp.eq.f32.partialorder %v330_v35, %v332_v49  ;;  %v338_v1 = vcvt.f32.s32 %v332_v49 }
 0x300   :  { %v334_v51 = vsel %vm333_vm9, %v329_v50, inf }
 0x301   :  { %335 = vmin.xlane.f32.xlu1 %v334_v51  ;;  %v339_v11 = vshll.u32 %v338_v1, 16 }
 0x386   :  { %v291_v60 = vpop.xlane.xlu0 %290 }
 0x387   :  { %v292_v62 = vcvt.f32.s32 %v291_v60 }
 0x389   :  { %v295_v5 = vadd.s32 %v294_v63, %v292_v62 }
 0x38a   :  { %v306_v2 = vpop.xlane.xlu1 %305  ;;  %v321_v3 = vpop.xlane.xlu0 %320 }
 0x38b   :  { %v307_v6 = vcvt.f32.s32 %v306_v2  ;;  %v322_v7 = vcvt.f32.s32 %v321_v3  ;;  %vm346_vm11 = vcmp.eq.s32.totalorder %v719_v8, %v295_v5 }
 0x38d   :  { %v310_v10 = vadd.s32 %v309_v4, %v307_v6  ;;  %v325_v15 = vadd.s32 %v324_v9, %v322_v7 }
 0x38e   :  { %v336_v14 = vpop.xlane.xlu1 %335 }
 0x38f   :  { %vm347_vm12 = vcmp.eq.s32.totalorder %v719_v8, %v310_v10  ;;  %v337_v16 = vcvt.f32.s32 %v336_v14  ;;  %vm348_vm14 = vcmp.eq.s32.totalorder %v719_v8, %v325_v15 }
 0x390   :  { %vm938_vm13 = vmpackc.low %vm347_vm12, %vm346_vm11 }
 0x391   :  { %v340_v17 = vadd.s32 %v339_v11, %v337_v16  ;;  %939 = vmatpush3.bf16.msk.msra.mxu1 %vm938_vm13, %v991_v18 }
 0x392   :  { %940 = vmatprep.subr.bf16.mxu1 %v988_v52 }
 0x393   :  { %vm349_vm15 = vcmp.eq.s32.totalorder %v719_v8, %v340_v17 }
 0x394   :  { %vm941_vm1 = vmpackc.low %vm349_vm15, %vm348_vm14 }
 0x395   :  { %942 = vmatpush3.bf16.msk.msra.mxu1 %vm941_vm1, %v991_v18 }
 0x396   :  { %943 = vmatprep.subr.bf16.mxu1 %v988_v52 }
 0x398   :  { %864 = vmatmul.mubr.msk.f32.vlgmr.msra.gmra.mrb[4].mxu1 %vm160_vm0, %v442_v19 }
 0x399   :  { %945 = vmatpush3.bf16.msra.mxu1 %v1161_v13  ;;  %874 = vmatprep.mubr.msk.f32.mxu1 %vm989_vm10, %v990_v53  ;;  %v963_v13 = vld [vmem:[%s1228_s9 + $0x38] sm:$0xff]   ;;  %s964_s9 = scalar_lea.vmem %s707_s16, 32 }
 0x39a   :  { %946 = vmatprep.subr.bf16.mxu1 %v988_v52  ;;  %892 = vmatpush3.bf16.msra.mxu0 %v963_v13  ;;  %p965_p0 = scmp.ne.s32.totalorder %s707_s16, %s964_s9  ;;  %p970_p2 = scmp.lt.s32.totalorder %s964_s9, %s964_s9 }
 0x39c   :  { %p971_p3 = por %p970_p2, %p969_p1 }
 0x39d   :  { %948 = vmatpush3.bf16.msra.mxu1 %v1159_v12 }
 0x39e   :  { %p972_p4 = pnand %p971_p3, %p965_p0 }
 0x3a0   :  { %875 = vmatmul.mubr.msk.f32.vlgmr.msra.gmra.mrb[6].mxu1 %vm160_vm0, %v442_v19 }
 0x46b   :  { %v512_v12 = vpop.f32.mrb[4].mxu1 }
 0x46c   :  { %v865_v22 = vpop.f32.mrb[5].mxu1 }
 0x473   :  { %v582_v23 = vpop.f32.mrb[6].mxu1 }
 0x474   :  { %v586_v24 = vmul.f32 %v582_v23, %v512_v12  ;;  %v876_v25 = vpop.f32.mrb[7].mxu1 }
 0x476   :  { %v587_v26 = vpack.c.bf16 %v586_v24, %v586_v24 }
 0x478   :  { %894 = vmatmul.mubr.bf16.vlgmr.msra.gmra.mrb[8].mxu0 %v587_v26 }
 0x54b   :  { %v693_v28 = vpop.f32.mrb[8].mxu0 }
 0x54c   :  { %v694_v29 = vadd.f32 %v735_v27, %v693_v28  ;;  %v895_v30 = vpop.f32.mrb[9].mxu0 }
 0x54d   :  { %v696_v31 = vpop.f32.mrb[10].mxu0 }
 0x54e   :  { %699 = vst [vmem:[#allocation2] sm:$0x3] %v694_v29  ;;  %v896_v32 = vpop.f32.mrb[11].mxu0 }
 0x54f   :  { %975 = shalt.err (!%p972_p4)
}
 0x550   :  { %s976_s10 = scalar_lea.hbm %s1230_s11, 32 }
 0x551   :  { %p977_p5 = scmp.ne.s32.totalorder %s1230_s11, %s976_s10  ;;  %p980_p6 = scmp.lt.u32.totalorder %s976_s10, %s1230_s11 }
 0x553   :  { %p982_p7 = pnand %p980_p6, %p977_p5 }
 0x555   :  { %985 = shalt.err (!%p982_p7)
}
 0x556   :  { %709 = dma.vmem_to_hbm [thread:$0]  %s707_s16, 32, %s1230_s11, [#allocation3]  }
 0x557   :  { %986 = dma.done.wait [#allocation3], 32  }
 0x558   :  { %987 = vsyncadd [#allocation3], 4294967264 }
 0x559   :  { %713 = vsyncpa [#allocation3], 1 }

</bundles_post_ra>
